<compile_context>
chip_gen: v7x
topology: tpu7x:2x2x1
jax: 0.10.0
libtpu: 0.0.40
codegen_flags: <defaults>
</compile_context>

<pallas_src>
import functools

import jax
import jax.numpy as jnp
from jax.experimental import pallas as pl
from jax.experimental.pallas import tpu as pltpu

_SUBLANE = 8


def _round_up(n, m):
    return ((n + m - 1) // m) * m


def _round_down(n, m):
    return (n // m) * m


def _res_kernel(x_ref, w1_ref, b1_ref, w2_ref, b2_ref, o_ref, *, linearity):
    """out = linearity * x + fc2'(relu(fc1(x))); fc2' already carries (1-linearity)."""
    x = x_ref[...]                                    # (TB, W)
    xf = x.astype(jnp.float32)                        # residual path in f32
    xb = x.astype(w1_ref.dtype)                       # bf16 operand for the MXU
    h = jnp.dot(xb, w1_ref[...], preferred_element_type=jnp.float32) + b1_ref[...]
    h = jnp.maximum(h, 0.0)                           # ReLU == clamp(min=0), f32
    y = jnp.dot(h.astype(w2_ref.dtype), w2_ref[...],
                preferred_element_type=jnp.float32) + b2_ref[...]
    o_ref[...] = (linearity * xf + y).astype(o_ref.dtype)


def prepare_params(w1, b1, w2, b2, linearity, *, weight_dtype=jnp.bfloat16):
    """One-time prep at parameter-load time (NOT per forward call).

    Transposes PyTorch (out,in) weights to (in,out), folds the constant
    (1 - linearity) into fc2's weight/bias, and casts weights to bf16 for the
    MXU (biases stay f32; they are added after the f32 accumulation).
    Weights are kept at their natural width so the forward pass needs no
    per-call x padding or output slicing.
    """
    scale = 1.0 - float(linearity)
    width = w1.shape[0]
    w1t = w1.T.astype(weight_dtype)
    w2t = (w2.T * scale).astype(weight_dtype)
    b1p = b1.reshape(1, width).astype(jnp.float32)
    b2p = (b2 * scale).reshape(1, width).astype(jnp.float32)
    return (w1t, b1p, w2t, b2p, width)


def _vmem_budget_bytes():
    """Generation-aware scoped-VMEM budget: ~80% of per-core physical VMEM."""
    cap = 64 << 20                                    # conservative default (v7x per-TC)
    try:
        cap = int(getattr(pltpu.get_tpu_info(), "vmem_capacity_bytes", cap))
    except Exception:
        pass
    return int(cap * 0.8)                             # ~51 MiB v7x, ~102 MiB v5e/v6e


def _choose_tb(B, W, budget, wbytes, weight_bufs, block_b_cap):
    """Largest batch tile that fits the VMEM budget, with >= 2 grid steps."""
    resident = weight_bufs * (2 * W * W * wbytes + 2 * W * 4)
    avail = budget - resident - (2 << 20)
    per_row = (2 + 2 + 3) * W * 4      # 2 x-bufs + 2 out-bufs + ~3 f32 temps per row
    tb = avail // per_row if avail > 0 else _SUBLANE
    tb = int(max(_SUBLANE, min(block_b_cap, tb)))
    bp = _round_up(B, _SUBLANE)
    tb = min(tb, bp)
    # Keep at least 2 grid steps when the batch allows: "parallel" then shards
    # steps across both v7x TensorCores (negligible ~0.35us/step cost elsewhere).
    if bp >= 2 * _SUBLANE:
        tb = min(tb, _round_up((bp + 1) // 2, _SUBLANE))
    if tb >= 256:                       # MXU-friendly snap for large tiles
        tb = _round_down(tb, 256)
    else:
        tb = _round_down(tb, _SUBLANE)
    return max(tb, _SUBLANE)


def res_forward(x, params, linearity, *, block_b=1024, out_dtype=None):
    """x: (B, W). params: output of prepare_params(). linearity: static float."""
    w1t, b1p, w2t, b2p, width = params
    B, W = x.shape
    assert W == width, "width mismatch with prepared params"
    out_dtype = x.dtype if out_dtype is None else jnp.dtype(out_dtype)

    budget = _vmem_budget_bytes()
    wbytes = jnp.dtype(w1t.dtype).itemsize

    # TODO(synk): add a width-tiled (reduction-axis) fallback with a VMEM h
    # accumulator once resident weights (2*W*W*wbytes) exceed the per-TC VMEM
    # budget (~W >= 3500 on v7x, ~W >= 5000 on v5e/v6e).

    flops = 2 * 2 * B * W * W                          # two matmuls
    bytes_accessed = (B * W * (x.dtype.itemsize + jnp.dtype(out_dtype).itemsize)
                      + 2 * W * W * wbytes + 2 * W * 4)
    cost = pl.CostEstimate(flops=flops, transcendentals=0,
                           bytes_accessed=bytes_accessed)

    kernel = functools.partial(_res_kernel, linearity=float(linearity))

    def _bs(shape, imap, mode):
        if mode is None:
            return pl.BlockSpec(shape, imap)
        return pl.BlockSpec(shape, imap, pipeline_mode=mode)

    def _run(weight_bufs):
        tb = _choose_tb(B, W, budget, wbytes, weight_bufs, block_b)
        grid = (pl.cdiv(B, tb),)
        # Grid-invariant weight/bias blocks: single-buffer so their VMEM
        # footprint is not doubled by the pipeline.
        wmode = pl.Buffered(1) if weight_bufs == 1 else None
        vmem_needed = (weight_bufs * (2 * W * W * wbytes + 2 * W * 4)
                       + (2 + 2 + 3) * tb * W * 4
                       + (2 << 20))
        vmem_limit = int(min(max(vmem_needed, 4 << 20), budget))
        return pl.pallas_call(
            kernel,
            out_shape=jax.ShapeDtypeStruct((B, W), out_dtype),
            grid=grid,
            in_specs=[
                _bs((tb, W), lambda i: (i, 0), None),   # x: tiled over batch
                _bs((W, W), lambda i: (0, 0), wmode),   # w1 (VMEM-resident)
                _bs((1, W), lambda i: (0, 0), wmode),   # b1
                _bs((W, W), lambda i: (0, 0), wmode),   # w2 (carries 1-linearity)
                _bs((1, W), lambda i: (0, 0), wmode),   # b2 (carries 1-linearity)
            ],
            out_specs=pl.BlockSpec((tb, W), lambda i: (i, 0)),
            compiler_params=pltpu.CompilerParams(
                dimension_semantics=("parallel",),      # batch steps independent
                vmem_limit_bytes=vmem_limit),
            cost_estimate=cost,
        )(x, w1t, b1p, w2t, b2p)

    try:
        return _run(weight_bufs=1)
    except Exception:
        # pl.Buffered(1) not supported by this jax version: default buffering.
        return _run(weight_bufs=2)


# ----------------------------------------------------------------------------
# Demo / correctness harness.
# Note: at demo scale (B=8, W=32) a standalone pallas_call is dominated by
# fixed dispatch overhead; in production, batch many rows/layers per call.
# ----------------------------------------------------------------------------

def _init_params(key, width):
    """Deterministic init matching the module's __init__ distributions."""
    k1, k2 = jax.random.split(key)
    fan_in = fan_out = width
    a1 = (6.0 / (fan_in + fan_out)) ** 0.5             # xavier_uniform
    w1 = jax.random.uniform(k1, (width, width), jnp.float32, -a1, a1)
    a2 = (6.0 / fan_in) ** 0.5                         # kaiming_uniform (a=0, fan_in)
    w2 = jax.random.uniform(k2, (width, width), jnp.float32, -a2, a2)
    b1 = jnp.zeros((width,), jnp.float32)
    b2 = jnp.zeros((width,), jnp.float32)
    return w1, b1, w2, b2


def _reference_f32(x, w1, b1, w2, b2, linearity):
    scale = 1.0 - linearity
    h = jnp.maximum(x @ w1.T + b1, 0.0)
    return linearity * x + scale * (h @ w2.T + b2)


def _reference_bf16(x, w1, b1, w2, b2, linearity):
    """Reference with the same bf16 weight/activation casts, f32 accumulation."""
    scale = 1.0 - linearity
    w1b = w1.T.astype(jnp.bfloat16).astype(jnp.float32)
    w2b = (w2.T * scale).astype(jnp.bfloat16).astype(jnp.float32)
    xb = x.astype(jnp.bfloat16).astype(jnp.float32)
    h = jnp.maximum(xb @ w1b + b1, 0.0)
    hb = h.astype(jnp.bfloat16).astype(jnp.float32)
    return linearity * x + (hb @ w2b + b2 * scale)


if __name__ == "__main__":
    width = 32
    linearity = 0.3

    key = jax.random.PRNGKey(0)
    kx1, kx2, kp = jax.random.split(key, 3)
    w1, b1, w2, b2 = _init_params(kp, width)
    params = prepare_params(w1, b1, w2, b2, linearity)   # one-time prep

    # Case 1: batch that exactly fills the tile.
    x1 = jax.random.normal(kx1, (8, width), jnp.float32)
    out1 = jax.block_until_ready(res_forward(x1, params, linearity))
    assert out1.shape == (8, width)
    assert jnp.allclose(out1, _reference_bf16(x1, w1, b1, w2, b2, linearity),
                        atol=1e-4, rtol=1e-4), "mismatch vs bf16 reference (B=8)"
    assert jnp.allclose(out1, _reference_f32(x1, w1, b1, w2, b2, linearity),
                        atol=5e-2, rtol=5e-2), "mismatch vs f32 reference (B=8)"

    # Case 2: ragged batch (exercises the masked partial last block — no
    # wrapper-side padding or output slicing).
    x2 = jax.random.normal(kx2, (13, width), jnp.float32)
    out2 = jax.block_until_ready(res_forward(x2, params, linearity))
    assert out2.shape == (13, width)
    assert jnp.allclose(out2, _reference_bf16(x2, w1, b1, w2, b2, linearity),
                        atol=1e-4, rtol=1e-4), "mismatch vs bf16 reference (B=13)"
    assert jnp.allclose(out2, _reference_f32(x2, w1, b1, w2, b2, linearity),
                        atol=5e-2, rtol=5e-2), "mismatch vs f32 reference (B=13)"

    print("KERNEL_OK")
</pallas_src>

<mosaic_0001>
module attributes {stable_mosaic.version = 11 : i64} {
  func.func @_res_kernel(%arg0: i32, %arg1: memref<8x32xf32, #tpu.memory_space<vmem>>, %arg2: memref<32x32xbf16, #tpu.memory_space<vmem>>, %arg3: memref<1x32xf32, #tpu.memory_space<vmem>>, %arg4: memref<32x32xbf16, #tpu.memory_space<vmem>>, %arg5: memref<1x32xf32, #tpu.memory_space<vmem>>, %arg6: memref<8x32xf32, #tpu.memory_space<vmem>>) attributes {dimension_semantics = [#tpu.dimension_semantics<parallel>], iteration_bounds = array<i64: 1>, scalar_prefetch = 0 : i64, scratch_operands = 0 : i64, tpu.core_type = #tpu.core_type<tc>, window_params = [{transform_indices = @transform_0, window_bounds = array<i64: 8, 32>}, {pipeline_mode = #tpu.pipeline_mode<synchronous>, transform_indices = @transform_1, window_bounds = array<i64: 32, 32>}, {pipeline_mode = #tpu.pipeline_mode<synchronous>, transform_indices = @transform_2, window_bounds = array<i64: 1, 32>}, {pipeline_mode = #tpu.pipeline_mode<synchronous>, transform_indices = @transform_3, window_bounds = array<i64: 32, 32>}, {pipeline_mode = #tpu.pipeline_mode<synchronous>, transform_indices = @transform_4, window_bounds = array<i64: 1, 32>}, {transform_indices = @transform_5, window_bounds = array<i64: 8, 32>}]} {
    %c0 = arith.constant 0 : index
    %c0_0 = arith.constant 0 : index
    %0 = vector.load %arg1[%c0, %c0_0] : memref<8x32xf32, #tpu.memory_space<vmem>>, vector<8x32xf32>
    %1 = arith.truncf %0 : vector<8x32xf32> to vector<8x32xbf16>
    %c0_1 = arith.constant 0 : index
    %c0_2 = arith.constant 0 : index
    %2 = vector.load %arg2[%c0_1, %c0_2] : memref<32x32xbf16, #tpu.memory_space<vmem>>, vector<32x32xbf16>
    %cst = arith.constant dense<0.000000e+00> : vector<8x32xf32>
    %3 = tpu.matmul %1, %2, %cst {dimension_numbers = #tpu.dot_dimension_numbers<[1], [0], [0], [1], [0, 0, 1, 1], [], []>} : vector<8x32xbf16>, vector<32x32xbf16>, vector<8x32xf32> -> vector<8x32xf32>
    %c0_3 = arith.constant 0 : index
    %c0_4 = arith.constant 0 : index
    %4 = vector.load %arg3[%c0_3, %c0_4] : memref<1x32xf32, #tpu.memory_space<vmem>>, vector<1x32xf32>
    %5 = vector.broadcast %4 : vector<1x32xf32> to vector<8x32xf32>
    %6 = arith.addf %3, %5 : vector<8x32xf32>
    %cst_5 = arith.constant 0.000000e+00 : f32
    %7 = vector.broadcast %cst_5 : f32 to vector<8x32xf32>
    %8 = arith.maximumf %6, %7 : vector<8x32xf32>
    %9 = arith.truncf %8 : vector<8x32xf32> to vector<8x32xbf16>
    %c0_6 = arith.constant 0 : index
    %c0_7 = arith.constant 0 : index
    %10 = vector.load %arg4[%c0_6, %c0_7] : memref<32x32xbf16, #tpu.memory_space<vmem>>, vector<32x32xbf16>
    %cst_8 = arith.constant dense<0.000000e+00> : vector<8x32xf32>
    %11 = tpu.matmul %9, %10, %cst_8 {dimension_numbers = #tpu.dot_dimension_numbers<[1], [0], [0], [1], [0, 0, 1, 1], [], []>} : vector<8x32xbf16>, vector<32x32xbf16>, vector<8x32xf32> -> vector<8x32xf32>
    %c0_9 = arith.constant 0 : index
    %c0_10 = arith.constant 0 : index
    %12 = vector.load %arg5[%c0_9, %c0_10] : memref<1x32xf32, #tpu.memory_space<vmem>>, vector<1x32xf32>
    %13 = vector.broadcast %12 : vector<1x32xf32> to vector<8x32xf32>
    %14 = arith.addf %11, %13 : vector<8x32xf32>
    %cst_11 = arith.constant 3.000000e-01 : f32
    %15 = vector.broadcast %cst_11 : f32 to vector<8x32xf32>
    %16 = arith.mulf %15, %0 : vector<8x32xf32>
    %17 = arith.addf %16, %14 : vector<8x32xf32>
    %c0_12 = arith.constant 0 : index
    %c0_13 = arith.constant 0 : index
    %18 = vector.load %arg6[%c0_12, %c0_13] : memref<8x32xf32, #tpu.memory_space<vmem>>, vector<8x32xf32>
    tpu.vector_store %arg6[%c0_12, %c0_13], %17 {strides = array<i32>} : memref<8x32xf32, #tpu.memory_space<vmem>>, vector<8x32xf32>,
    return
  }
  func.func @transform_0(%arg0: i32) -> (i32, i32) {
    %c0_i32 = arith.constant 0 : i32
    %c0_i32_0 = arith.constant 0 : i32
    return %arg0, %c0_i32 : i32, i32
  }
  func.func @transform_1(%arg0: i32) -> (i32, i32) {
    %c0_i32 = arith.constant 0 : i32
    %c0_i32_0 = arith.constant 0 : i32
    %c0_i32_1 = arith.constant 0 : i32
    return %c0_i32, %c0_i32_0 : i32, i32
  }
  func.func @transform_2(%arg0: i32) -> (i32, i32) {
    %c0_i32 = arith.constant 0 : i32
    %c0_i32_0 = arith.constant 0 : i32
    %c0_i32_1 = arith.constant 0 : i32
    return %c0_i32, %c0_i32_0 : i32, i32
  }
  func.func @transform_3(%arg0: i32) -> (i32, i32) {
    %c0_i32 = arith.constant 0 : i32
    %c0_i32_0 = arith.constant 0 : i32
    %c0_i32_1 = arith.constant 0 : i32
    return %c0_i32, %c0_i32_0 : i32, i32
  }
  func.func @transform_4(%arg0: i32) -> (i32, i32) {
    %c0_i32 = arith.constant 0 : i32
    %c0_i32_0 = arith.constant 0 : i32
    %c0_i32_1 = arith.constant 0 : i32
    return %c0_i32, %c0_i32_0 : i32, i32
  }
  func.func @transform_5(%arg0: i32) -> (i32, i32) {
    %c0_i32 = arith.constant 0 : i32
    %c0_i32_0 = arith.constant 0 : i32
    return %arg0, %c0_i32 : i32, i32
  }
}

module attributes {stable_mosaic.version = 11 : i64} {
  func.func @_res_kernel(%arg0: i32, %arg1: memref<8x32xf32, #tpu.memory_space<vmem>>, %arg2: memref<32x32xbf16, #tpu.memory_space<vmem>>, %arg3: memref<1x32xf32, #tpu.memory_space<vmem>>, %arg4: memref<32x32xbf16, #tpu.memory_space<vmem>>, %arg5: memref<1x32xf32, #tpu.memory_space<vmem>>, %arg6: memref<8x32xf32, #tpu.memory_space<vmem>>) attributes {dimension_semantics = [#tpu.dimension_semantics<parallel>], iteration_bounds = array<i64: 1>, scalar_prefetch = 0 : i64, scratch_operands = 0 : i64, tpu.core_type = #tpu.core_type<tc>, window_params = [{transform_indices = @transform_0, window_bounds = array<i64: 8, 32>}, {pipeline_mode = #tpu.pipeline_mode<synchronous>, transform_indices = @transform_1, window_bounds = array<i64: 32, 32>}, {pipeline_mode = #tpu.pipeline_mode<synchronous>, transform_indices = @transform_2, window_bounds = array<i64: 1, 32>}, {pipeline_mode = #tpu.pipeline_mode<synchronous>, transform_indices = @transform_3, window_bounds = array<i64: 32, 32>}, {pipeline_mode = #tpu.pipeline_mode<synchronous>, transform_indices = @transform_4, window_bounds = array<i64: 1, 32>}, {transform_indices = @transform_5, window_bounds = array<i64: 8, 32>}]} {
    %c0 = arith.constant 0 : index
    %c0_0 = arith.constant 0 : index
    %0 = vector.load %arg1[%c0, %c0_0] : memref<8x32xf32, #tpu.memory_space<vmem>>, vector<8x32xf32>
    %1 = arith.truncf %0 : vector<8x32xf32> to vector<8x32xbf16>
    %c0_1 = arith.constant 0 : index
    %c0_2 = arith.constant 0 : index
    %2 = vector.load %arg2[%c0_1, %c0_2] : memref<32x32xbf16, #tpu.memory_space<vmem>>, vector<32x32xbf16>
    %cst = arith.constant dense<0.000000e+00> : vector<8x32xf32>
    %3 = tpu.matmul %1, %2, %cst {dimension_numbers = #tpu.dot_dimension_numbers<[1], [0], [0], [1], [0, 0, 1, 1], [], []>} : vector<8x32xbf16>, vector<32x32xbf16>, vector<8x32xf32> -> vector<8x32xf32>
    %c0_3 = arith.constant 0 : index
    %c0_4 = arith.constant 0 : index
    %4 = vector.load %arg3[%c0_3, %c0_4] : memref<1x32xf32, #tpu.memory_space<vmem>>, vector<1x32xf32>
    %5 = vector.broadcast %4 : vector<1x32xf32> to vector<8x32xf32>
    %6 = arith.addf %3, %5 : vector<8x32xf32>
    %cst_5 = arith.constant 0.000000e+00 : f32
    %7 = vector.broadcast %cst_5 : f32 to vector<8x32xf32>
    %8 = arith.maximumf %6, %7 : vector<8x32xf32>
    %9 = arith.truncf %8 : vector<8x32xf32> to vector<8x32xbf16>
    %c0_6 = arith.constant 0 : index
    %c0_7 = arith.constant 0 : index
    %10 = vector.load %arg4[%c0_6, %c0_7] : memref<32x32xbf16, #tpu.memory_space<vmem>>, vector<32x32xbf16>
    %cst_8 = arith.constant dense<0.000000e+00> : vector<8x32xf32>
    %11 = tpu.matmul %9, %10, %cst_8 {dimension_numbers = #tpu.dot_dimension_numbers<[1], [0], [0], [1], [0, 0, 1, 1], [], []>} : vector<8x32xbf16>, vector<32x32xbf16>, vector<8x32xf32> -> vector<8x32xf32>
    %c0_9 = arith.constant 0 : index
    %c0_10 = arith.constant 0 : index
    %12 = vector.load %arg5[%c0_9, %c0_10] : memref<1x32xf32, #tpu.memory_space<vmem>>, vector<1x32xf32>
    %13 = vector.broadcast %12 : vector<1x32xf32> to vector<8x32xf32>
    %14 = arith.addf %11, %13 : vector<8x32xf32>
    %cst_11 = arith.constant 3.000000e-01 : f32
    %15 = vector.broadcast %cst_11 : f32 to vector<8x32xf32>
    %16 = arith.mulf %15, %0 : vector<8x32xf32>
    %17 = arith.addf %16, %14 : vector<8x32xf32>
    %c0_12 = arith.constant 0 : index
    %c0_13 = arith.constant 0 : index
    %18 = vector.load %arg6[%c0_12, %c0_13] : memref<8x32xf32, #tpu.memory_space<vmem>>, vector<8x32xf32>
    tpu.vector_store %arg6[%c0_12, %c0_13], %17 {strides = array<i32>} : memref<8x32xf32, #tpu.memory_space<vmem>>, vector<8x32xf32>,
    return
  }
  func.func @transform_0(%arg0: i32) -> (i32, i32) {
    %c0_i32 = arith.constant 0 : i32
    %c0_i32_0 = arith.constant 0 : i32
    return %arg0, %c0_i32 : i32, i32
  }
  func.func @transform_1(%arg0: i32) -> (i32, i32) {
    %c0_i32 = arith.constant 0 : i32
    %c0_i32_0 = arith.constant 0 : i32
    %c0_i32_1 = arith.constant 0 : i32
    return %c0_i32, %c0_i32_0 : i32, i32
  }
  func.func @transform_2(%arg0: i32) -> (i32, i32) {
    %c0_i32 = arith.constant 0 : i32
    %c0_i32_0 = arith.constant 0 : i32
    %c0_i32_1 = arith.constant 0 : i32
    return %c0_i32, %c0_i32_0 : i32, i32
  }
  func.func @transform_3(%arg0: i32) -> (i32, i32) {
    %c0_i32 = arith.constant 0 : i32
    %c0_i32_0 = arith.constant 0 : i32
    %c0_i32_1 = arith.constant 0 : i32
    return %c0_i32, %c0_i32_0 : i32, i32
  }
  func.func @transform_4(%arg0: i32) -> (i32, i32) {
    %c0_i32 = arith.constant 0 : i32
    %c0_i32_0 = arith.constant 0 : i32
    %c0_i32_1 = arith.constant 0 : i32
    return %c0_i32, %c0_i32_0 : i32, i32
  }
  func.func @transform_5(%arg0: i32) -> (i32, i32) {
    %c0_i32 = arith.constant 0 : i32
    %c0_i32_0 = arith.constant 0 : i32
    return %arg0, %c0_i32 : i32, i32
  }
}

</mosaic_0001>

<bundles_post_ra>
// kernel: tpu_custom_call.1
= control target key start
LH: loop header
LB: loop body
LE: loop exit
PB: predicated region body
PF: predicated region fallthrough
CT: control target
= control target key end

     0   :  { %10 = vsyncpa [#allocation3], 0  ;;  %s454_s0 = inlined_call_operand.hbm [shape: f32[8,32], index: 0, kind: input, shape index: {}]   ;;  %s455_s1 = inlined_call_operand.hbm [shape: bf16[32,32], index: 1, kind: input, shape index: {}]   ;;  %s456_s2 = inlined_call_operand.vmem [shape: f32[1,32], index: 2, kind: input, shape index: {}]   ;;  %s457_s3 = inlined_call_operand.hbm [shape: bf16[32,32], index: 3, kind: input, shape index: {}]   ;;  %s458_s4 = inlined_call_operand.vmem [shape: f32[1,32], index: 4, kind: input, shape index: {}]   ;;  %s459_s5 = inlined_call_operand.hbm [shape: f32[8,32], index: 5, kind: output, shape index: {}]  }
   0x1   :  { %11 = vsyncpa [#allocation6], 0 }
   0x2   :  { %12 = vsyncpa [#allocation4], 0  ;;  %s353_s18 = smov [#allocation5]   ;;  %s259_s22 = scalar_lea.hbm %s455_s1, 256 }
   0x3   :  { %s28_s19 = sshll.u32 %s353_s18, 4  ;;  %p260_p0 = scmp.ne.s32.totalorder %s455_s1, %s259_s22  ;;  %s29_s19 = int_to_ptr.vmem [resolvable:$true] %s28_s19 }
   0x4   :  { %p263_p1 = scmp.lt.u32.totalorder %s259_s22, %s455_s1 }
   0x6   :  { %p265_p2 = pnand %p263_p1, %p260_p0 }
   0x8   :  { %268 = shalt.err (!%p265_p2)
}
   0x9   :  { %s269_s27 = scalar_lea.vmem %s29_s19, 256  ;;  %p274_p4 = scmp.lt.s32.totalorder %s29_s19, %s29_s19 }
   0xa   :  { %p270_p3 = scmp.ne.s32.totalorder %s29_s19, %s269_s27  ;;  %p275_p5 = scmp.lt.s32.totalorder %s269_s27, %s269_s27 }
   0xc   :  { %p276_p6 = por %p275_p5, %p274_p4 }
   0xe   :  { %p277_p7 = pnand %p276_p6, %p270_p3 }
  0x10   :  { %280 = shalt.err (!%p277_p7)
}
  0x11   :  { %s354_s28 = smov 64   ;;  %s355_s29 = smov 4  }
  0x12   :  { %34 = dma.hbm_to_vmem [thread:$0]  %s455_s1, 256, %s29_s19, [#allocation6], %s354_s28, %s354_s28, %s355_s29  }
  0x13   :  { %s356_s7 = smov [#allocation2]   ;;  %s357_s9 = smov [#allocation7]  }
  0x14   :  { %s19_s8 = sshll.u32 %s356_s7, 4  ;;  %s42_s10 = sshll.u32 %s357_s9, 4  ;;  %s20_s8 = int_to_ptr.vmem [resolvable:$true] %s19_s8  ;;  %s43_s10 = int_to_ptr.vmem [resolvable:$true] %s42_s10 }
  0x15   :  { %s281_s13 = scalar_lea.hbm %s454_s0, 128 }
  0x16   :  { %p282_p8 = scmp.ne.s32.totalorder %s454_s0, %s281_s13  ;;  %p285_p9 = scmp.lt.u32.totalorder %s281_s13, %s454_s0 }
  0x18   :  { %p287_p10 = pnand %p285_p9, %p282_p8 }
  0x1a   :  { %290 = shalt.err (!%p287_p10)
}
  0x1b   :  { %s291_s1 = scalar_lea.vmem %s20_s8, 128  ;;  %p296_p12 = scmp.lt.s32.totalorder %s20_s8, %s20_s8 }
  0x1c   :  { %p292_p11 = scmp.ne.s32.totalorder %s20_s8, %s291_s1  ;;  %p297_p13 = scmp.lt.s32.totalorder %s291_s1, %s291_s1 }
  0x1e   :  { %p298_p0 = por %p297_p13, %p296_p12 }
  0x20   :  { %p299_p1 = pnand %p298_p0, %p292_p11 }
  0x22   :  { %302 = shalt.err (!%p299_p1)
}
  0x23   :  { %22 = dma.hbm_to_vmem [thread:$0]  %s454_s0, 128, %s20_s8, [#allocation3]  }
  0x24   :  { %s303_s22 = scalar_lea.hbm %s457_s3, 256 }
  0x25   :  { %p304_p2 = scmp.ne.s32.totalorder %s457_s3, %s303_s22  ;;  %p307_p3 = scmp.lt.u32.totalorder %s303_s22, %s457_s3 }
  0x27   :  { %p309_p4 = pnand %p307_p3, %p304_p2 }
  0x29   :  { %312 = shalt.err (!%p309_p4)
}
  0x2a   :  { %s313_s27 = scalar_lea.vmem %s43_s10, 256  ;;  %p318_p6 = scmp.lt.s32.totalorder %s43_s10, %s43_s10 }
  0x2b   :  { %p314_p5 = scmp.ne.s32.totalorder %s43_s10, %s313_s27  ;;  %p319_p7 = scmp.lt.s32.totalorder %s313_s27, %s313_s27 }
  0x2d   :  { %p320_p8 = por %p319_p7, %p318_p6 }
  0x2f   :  { %p321_p9 = pnand %p320_p8, %p314_p5 }
  0x31   :  { %324 = shalt.err (!%p321_p9)
}
  0x32   :  { %48 = dma.hbm_to_vmem [thread:$0]  %s457_s3, 256, %s43_s10, [#allocation6], %s354_s28, %s354_s28, %s355_s29  }
  0x33   :  { %347 = dma.done.wait [#allocation3], 128  }
  0x34   :  { %348 = vsyncadd [#allocation3], 4294967168 }
  0x35   :  { %349 = dma.done.wait [#allocation6], 512  }
  0x36   :  { %350 = vsyncadd [#allocation6], 4294966784  ;;  %v358_v0 = vmov 0.0   ;;  %vm359_vm0 = vmmov 0   ;;  %v255_v1 = vld [vmem:[#allocation5] sm:$0xff]   ;;  %v256_v2 = vld [vmem:[#allocation5 + $0x8] sm:$0xff]  }
  0x37   :  { %231 = vmatprep.subr.bf16.mxu0 %v358_v0  ;;  %235 = vmatprep.mubr.msk.bf16.mxu0 %vm359_vm0, %v358_v0  ;;  %v61_v3 = vld [vmem:[#allocation2] sm:$0xff]  ;;  %vm86_vm1 = vcmask 261120   ;;  %v257_v5 = vld [vmem:[#allocation7] sm:$0xff]   ;;  %s360_s7 = smov [#allocation8]  }
  0x38   :  { %239 = vmatprep.subr.bf16.mxu1 %v358_v0  ;;  %243 = vmatprep.mubr.msk.bf16.mxu1 %vm359_vm0, %v358_v0  ;;  %v62_v4 = vpack.c.bf16 %v61_v3, %v61_v3  ;;  %v258_v6 = vld [vmem:[#allocation7 + $0x8] sm:$0xff]   ;;  %v198_v16 = vmul.f32 0.3, %v61_v3  ;;  %s207_s8 = sshll.u32 %s360_s7, 4  ;;  %s208_s8 = int_to_ptr.vmem [resolvable:$true] %s207_s8 }
  0x39   :  { %232 = vmatpush3.bf16.msra.mxu0 %v255_v1  ;;  %240 = vmatpush3.bf16.msra.mxu1 %v257_v5  ;;  %v217_v7 = vld [vmem:[%s456_s2] ss:$0 sm:$0xff]  ;;  %s325_s2 = scalar_lea.vmem %s208_s8, 128  ;;  %p330_p11 = scmp.lt.s32.totalorder %s208_s8, %s208_s8 }
  0x3a   :  { %233 = vmatprep.subr.bf16.mxu0 %v358_v0  ;;  %241 = vmatprep.subr.bf16.mxu1 %v358_v0  ;;  %v221_v15 = vld [vmem:[%s458_s4] ss:$0 sm:$0xff]  ;;  %p326_p10 = scmp.ne.s32.totalorder %s208_s8, %s325_s2  ;;  %p331_p12 = scmp.lt.s32.totalorder %s325_s2, %s325_s2 }
  0x3c   :  { %p332_p13 = por %p331_p12, %p330_p11 }
  0x3d   :  { %234 = vmatpush3.bf16.msra.mxu0 %v256_v2  ;;  %242 = vmatpush3.bf16.msra.mxu1 %v258_v6 }
  0x3e   :  { %p333_p0 = pnand %p332_p13, %p326_p10 }
  0x40   :  { %236 = vmatmul.mubr.msk.bf16.vlgmr.msra.gmra.mrb[0].mxu0 %vm86_vm1, %v62_v4 }
 0x113   :  { %v124_v8 = vpop.f32.mrb[0].mxu0 }
 0x114   :  { %v125_v9 = vadd.f32 %v217_v7, %v124_v8  ;;  %v237_v10 = vpop.f32.mrb[1].mxu0 }
 0x115   :  { %v127_v11 = vpop.f32.mrb[2].mxu0 }
 0x116   :  { %v130_v12 = vmax.f32 %v125_v9, 0.0  ;;  %v238_v13 = vpop.f32.mrb[3].mxu0 }
 0x118   :  { %v131_v14 = vpack.c.bf16 %v130_v12, %v130_v12 }
 0x11a   :  { %244 = vmatmul.mubr.msk.bf16.vlgmr.msra.gmra.mrb[0].mxu1 %vm86_vm1, %v131_v14 }
 0x1ed   :  { %v192_v17 = vpop.f32.mrb[0].mxu1 }
 0x1ee   :  { %v193_v18 = vadd.f32 %v221_v15, %v192_v17  ;;  %v245_v19 = vpop.f32.mrb[1].mxu1 }
 0x1ef   :  { %v195_v20 = vpop.f32.mrb[2].mxu1 }
 0x1f0   :  { %v199_v21 = vadd.f32 %v198_v16, %v193_v18  ;;  %v246_v22 = vpop.f32.mrb[3].mxu1 }
 0x1f2   :  { %200 = vst.msk [vmem:[#allocation8] sm:$0xff] %vm86_vm1, %v199_v21 }
 0x1f3   :  { %336 = shalt.err (!%p333_p0)
}
 0x1f4   :  { %s337_s10 = scalar_lea.hbm %s459_s5, 128 }
 0x1f5   :  { %p338_p1 = scmp.ne.s32.totalorder %s459_s5, %s337_s10  ;;  %p341_p2 = scmp.lt.u32.totalorder %s337_s10, %s459_s5 }
 0x1f7   :  { %p343_p3 = pnand %p341_p2, %p338_p1 }
 0x1f9   :  { %346 = shalt.err (!%p343_p3)
}
 0x1fa   :  { %210 = dma.vmem_to_hbm [thread:$0]  %s208_s8, 128, %s459_s5, [#allocation4]  }
 0x1fb   :  { %351 = dma.done.wait [#allocation4], 128  }
 0x1fc   :  { %352 = vsyncadd [#allocation4], 4294967168 }
 0x1fd   :  { %214 = vsyncpa [#allocation3], 1 }
 0x1fe   :  { %215 = vsyncpa [#allocation6], 1 }
 0x1ff   :  { %216 = vsyncpa [#allocation4], 1 }

// kernel: tpu_custom_call.1
= control target key start
LH: loop header
LB: loop body
LE: loop exit
PB: predicated region body
PF: predicated region fallthrough
CT: control target
= control target key end

     0   :  { %10 = vsyncpa [#allocation3], 0  ;;  %s454_s0 = inlined_call_operand.hbm [shape: f32[8,32], index: 0, kind: input, shape index: {}]   ;;  %s455_s1 = inlined_call_operand.hbm [shape: bf16[32,32], index: 1, kind: input, shape index: {}]   ;;  %s456_s2 = inlined_call_operand.vmem [shape: f32[1,32], index: 2, kind: input, shape index: {}]   ;;  %s457_s3 = inlined_call_operand.hbm [shape: bf16[32,32], index: 3, kind: input, shape index: {}]   ;;  %s458_s4 = inlined_call_operand.vmem [shape: f32[1,32], index: 4, kind: input, shape index: {}]   ;;  %s459_s5 = inlined_call_operand.hbm [shape: f32[8,32], index: 5, kind: output, shape index: {}]  }
   0x1   :  { %11 = vsyncpa [#allocation6], 0 }
   0x2   :  { %12 = vsyncpa [#allocation4], 0  ;;  %s353_s18 = smov [#allocation5]   ;;  %s259_s22 = scalar_lea.hbm %s455_s1, 256 }
   0x3   :  { %s28_s19 = sshll.u32 %s353_s18, 4  ;;  %p260_p0 = scmp.ne.s32.totalorder %s455_s1, %s259_s22  ;;  %s29_s19 = int_to_ptr.vmem [resolvable:$true] %s28_s19 }
   0x4   :  { %p263_p1 = scmp.lt.u32.totalorder %s259_s22, %s455_s1 }
   0x6   :  { %p265_p2 = pnand %p263_p1, %p260_p0 }
   0x8   :  { %268 = shalt.err (!%p265_p2)
}
   0x9   :  { %s269_s27 = scalar_lea.vmem %s29_s19, 256  ;;  %p274_p4 = scmp.lt.s32.totalorder %s29_s19, %s29_s19 }
   0xa   :  { %p270_p3 = scmp.ne.s32.totalorder %s29_s19, %s269_s27  ;;  %p275_p5 = scmp.lt.s32.totalorder %s269_s27, %s269_s27 }
   0xc   :  { %p276_p6 = por %p275_p5, %p274_p4 }
   0xe   :  { %p277_p7 = pnand %p276_p6, %p270_p3 }
  0x10   :  { %280 = shalt.err (!%p277_p7)
}
  0x11   :  { %s354_s28 = smov 64   ;;  %s355_s29 = smov 4  }
  0x12   :  { %34 = dma.hbm_to_vmem [thread:$0]  %s455_s1, 256, %s29_s19, [#allocation6], %s354_s28, %s354_s28, %s355_s29  }
  0x13   :  { %s356_s7 = smov [#allocation2]   ;;  %s357_s9 = smov [#allocation7]  }
  0x14   :  { %s19_s8 = sshll.u32 %s356_s7, 4  ;;  %s42_s10 = sshll.u32 %s357_s9, 4  ;;  %s20_s8 = int_to_ptr.vmem [resolvable:$true] %s19_s8  ;;  %s43_s10 = int_to_ptr.vmem [resolvable:$true] %s42_s10 }
  0x15   :  { %s281_s13 = scalar_lea.hbm %s454_s0, 128 }
  0x16   :  { %p282_p8 = scmp.ne.s32.totalorder %s454_s0, %s281_s13  ;;  %p285_p9 = scmp.lt.u32.totalorder %s281_s13, %s454_s0 }
  0x18   :  { %p287_p10 = pnand %p285_p9, %p282_p8 }
  0x1a   :  { %290 = shalt.err (!%p287_p10)
}
  0x1b   :  { %s291_s1 = scalar_lea.vmem %s20_s8, 128  ;;  %p296_p12 = scmp.lt.s32.totalorder %s20_s8, %s20_s8 }
  0x1c   :  { %p292_p11 = scmp.ne.s32.totalorder %s20_s8, %s291_s1  ;;  %p297_p13 = scmp.lt.s32.totalorder %s291_s1, %s291_s1 }
  0x1e   :  { %p298_p0 = por %p297_p13, %p296_p12 }
  0x20   :  { %p299_p1 = pnand %p298_p0, %p292_p11 }
  0x22   :  { %302 = shalt.err (!%p299_p1)
}
  0x23   :  { %22 = dma.hbm_to_vmem [thread:$0]  %s454_s0, 128, %s20_s8, [#allocation3]  }
  0x24   :  { %s303_s22 = scalar_lea.hbm %s457_s3, 256 }
  0x25   :  { %p304_p2 = scmp.ne.s32.totalorder %s457_s3, %s303_s22  ;;  %p307_p3 = scmp.lt.u32.totalorder %s303_s22, %s457_s3 }
  0x27   :  { %p309_p4 = pnand %p307_p3, %p304_p2 }
  0x29   :  { %312 = shalt.err (!%p309_p4)
}
  0x2a   :  { %s313_s27 = scalar_lea.vmem %s43_s10, 256  ;;  %p318_p6 = scmp.lt.s32.totalorder %s43_s10, %s43_s10 }
  0x2b   :  { %p314_p5 = scmp.ne.s32.totalorder %s43_s10, %s313_s27  ;;  %p319_p7 = scmp.lt.s32.totalorder %s313_s27, %s313_s27 }
  0x2d   :  { %p320_p8 = por %p319_p7, %p318_p6 }
  0x2f   :  { %p321_p9 = pnand %p320_p8, %p314_p5 }
  0x31   :  { %324 = shalt.err (!%p321_p9)
}
  0x32   :  { %48 = dma.hbm_to_vmem [thread:$0]  %s457_s3, 256, %s43_s10, [#allocation6], %s354_s28, %s354_s28, %s355_s29  }
  0x33   :  { %347 = dma.done.wait [#allocation3], 128  }
  0x34   :  { %348 = vsyncadd [#allocation3], 4294967168 }
  0x35   :  { %349 = dma.done.wait [#allocation6], 512  }
  0x36   :  { %350 = vsyncadd [#allocation6], 4294966784  ;;  %v358_v0 = vmov 0.0   ;;  %vm359_vm0 = vmmov 0   ;;  %v255_v1 = vld [vmem:[#allocation5] sm:$0xff]   ;;  %v256_v2 = vld [vmem:[#allocation5 + $0x8] sm:$0xff]  }
  0x37   :  { %231 = vmatprep.subr.bf16.mxu0 %v358_v0  ;;  %235 = vmatprep.mubr.msk.bf16.mxu0 %vm359_vm0, %v358_v0  ;;  %v61_v3 = vld [vmem:[#allocation2] sm:$0xff]  ;;  %vm86_vm1 = vcmask 261120   ;;  %v257_v5 = vld [vmem:[#allocation7] sm:$0xff]   ;;  %s360_s7 = smov [#allocation8]  }
  0x38   :  { %239 = vmatprep.subr.bf16.mxu1 %v358_v0  ;;  %243 = vmatprep.mubr.msk.bf16.mxu1 %vm359_vm0, %v358_v0  ;;  %v62_v4 = vpack.c.bf16 %v61_v3, %v61_v3  ;;  %v258_v6 = vld [vmem:[#allocation7 + $0x8] sm:$0xff]   ;;  %v198_v16 = vmul.f32 0.3, %v61_v3  ;;  %s207_s8 = sshll.u32 %s360_s7, 4  ;;  %s208_s8 = int_to_ptr.vmem [resolvable:$true] %s207_s8 }
  0x39   :  { %232 = vmatpush3.bf16.msra.mxu0 %v255_v1  ;;  %240 = vmatpush3.bf16.msra.mxu1 %v257_v5  ;;  %v217_v7 = vld [vmem:[%s456_s2] ss:$0 sm:$0xff]  ;;  %s325_s2 = scalar_lea.vmem %s208_s8, 128  ;;  %p330_p11 = scmp.lt.s32.totalorder %s208_s8, %s208_s8 }
  0x3a   :  { %233 = vmatprep.subr.bf16.mxu0 %v358_v0  ;;  %241 = vmatprep.subr.bf16.mxu1 %v358_v0  ;;  %v221_v15 = vld [vmem:[%s458_s4] ss:$0 sm:$0xff]  ;;  %p326_p10 = scmp.ne.s32.totalorder %s208_s8, %s325_s2  ;;  %p331_p12 = scmp.lt.s32.totalorder %s325_s2, %s325_s2 }
  0x3c   :  { %p332_p13 = por %p331_p12, %p330_p11 }
  0x3d   :  { %234 = vmatpush3.bf16.msra.mxu0 %v256_v2  ;;  %242 = vmatpush3.bf16.msra.mxu1 %v258_v6 }
  0x3e   :  { %p333_p0 = pnand %p332_p13, %p326_p10 }
  0x40   :  { %236 = vmatmul.mubr.msk.bf16.vlgmr.msra.gmra.mrb[0].mxu0 %vm86_vm1, %v62_v4 }
 0x113   :  { %v124_v8 = vpop.f32.mrb[0].mxu0 }
 0x114   :  { %v125_v9 = vadd.f32 %v217_v7, %v124_v8  ;;  %v237_v10 = vpop.f32.mrb[1].mxu0 }
 0x115   :  { %v127_v11 = vpop.f32.mrb[2].mxu0 }
 0x116   :  { %v130_v12 = vmax.f32 %v125_v9, 0.0  ;;  %v238_v13 = vpop.f32.mrb[3].mxu0 }
 0x118   :  { %v131_v14 = vpack.c.bf16 %v130_v12, %v130_v12 }
 0x11a   :  { %244 = vmatmul.mubr.msk.bf16.vlgmr.msra.gmra.mrb[0].mxu1 %vm86_vm1, %v131_v14 }
 0x1ed   :  { %v192_v17 = vpop.f32.mrb[0].mxu1 }
 0x1ee   :  { %v193_v18 = vadd.f32 %v221_v15, %v192_v17  ;;  %v245_v19 = vpop.f32.mrb[1].mxu1 }
 0x1ef   :  { %v195_v20 = vpop.f32.mrb[2].mxu1 }
 0x1f0   :  { %v199_v21 = vadd.f32 %v198_v16, %v193_v18  ;;  %v246_v22 = vpop.f32.mrb[3].mxu1 }
 0x1f2   :  { %200 = vst.msk [vmem:[#allocation8] sm:$0xff] %vm86_vm1, %v199_v21 }
 0x1f3   :  { %336 = shalt.err (!%p333_p0)
}
 0x1f4   :  { %s337_s10 = scalar_lea.hbm %s459_s5, 128 }
 0x1f5   :  { %p338_p1 = scmp.ne.s32.totalorder %s459_s5, %s337_s10  ;;  %p341_p2 = scmp.lt.u32.totalorder %s337_s10, %s459_s5 }
 0x1f7   :  { %p343_p3 = pnand %p341_p2, %p338_p1 }
 0x1f9   :  { %346 = shalt.err (!%p343_p3)
}
 0x1fa   :  { %210 = dma.vmem_to_hbm [thread:$0]  %s208_s8, 128, %s459_s5, [#allocation4]  }
 0x1fb   :  { %351 = dma.done.wait [#allocation4], 128  }
 0x1fc   :  { %352 = vsyncadd [#allocation4], 4294967168 }
 0x1fd   :  { %214 = vsyncpa [#allocation3], 1 }
 0x1fe   :  { %215 = vsyncpa [#allocation6], 1 }
 0x1ff   :  { %216 = vsyncpa [#allocation4], 1 }

</bundles_post_ra>
